<compile_context>
chip_gen: v7x
topology: tpu7x:2x2x1
jax: 0.10.0
libtpu: 0.0.40
codegen_flags: <defaults>
</compile_context>

<pallas_src>
import math
import numpy as np
import jax
import jax.numpy as jnp
from jax.experimental import pallas as pl
from jax.experimental.pallas import tpu as pltpu


NUM_CORE_SPLITS = 2  # leading 'parallel' grid axis -> both TensorCores on v7x


# ----------------------------------------------------------------------------
# Pallas kernel: fused 1x1-conv transform + sum((W s - t)^2) over all layers
# ----------------------------------------------------------------------------
def _fused_transform_mse_kernel(tl_ref, tb_ref, s_ref, t_ref, w_ref,
                                loss_ref, acc_ref):
    # grid = (core_split, tile); the inner 'tile' axis is the reduction axis.
    i = pl.program_id(1)

    @pl.when(i == 0)
    def _():
        acc_ref[...] = jnp.zeros_like(acc_ref)

    # 1x1 conv over channels, lane-dense: (t_ch, s_ch) @ (s_ch, tm) -> (t_ch, tm)
    s_t = jnp.dot(w_ref[...], s_ref[...], preferred_element_type=jnp.float32)
    d = s_t - t_ref[...].astype(jnp.float32)
    acc_ref[...] += d * d                      # per-lane partial sums (VPU only)

    @pl.when(i == pl.num_programs(1) - 1)
    def _():
        # single cross-lane reduce per core split, written lane-dense
        loss_ref[...] = jnp.zeros_like(loss_ref) + jnp.sum(acc_ref[...])


def fused_transform_and_mse_loss(s_feats_cm, t_feats_cm, ws, *,
                                 feature_dtype=jnp.bfloat16, tm=512):
    """sum_i || W_i @ S_i - T_i ||_F^2 for all feature levels in ONE launch.

    s_feats_cm[i]: (s_ch_i, M_i)   student features, channels-first / M on lanes
    t_feats_cm[i]: (t_ch_i, M_i)   teacher features
    ws[i]:         (t_ch_i, s_ch_i) 1x1-conv weight (PyTorch layout, no bias)
    """
    assert tm % 128 == 0, "tm must be a multiple of the 128-lane width"
    num_layers = len(ws)
    assert num_layers == len(s_feats_cm) == len(t_feats_cm)

    # Pad channel counts to one common (multiple-of-8) shape so a single
    # BlockSpec covers every layer; zero padding contributes exactly 0 loss.
    s_ch_pad = int(-(-max(w.shape[1] for w in ws) // 8) * 8)
    t_ch_pad = int(-(-max(w.shape[0] for w in ws) // 8) * 8)

    s_parts, t_parts, blocks = [], [], []
    off = 0
    for l in range(num_layers):
        s_cm = s_feats_cm[l].astype(feature_dtype)
        t_cm = t_feats_cm[l].astype(feature_dtype)
        s_ch, m = s_cm.shape
        t_ch, m2 = t_cm.shape
        assert m == m2 and ws[l].shape == (t_ch, s_ch)
        m_pad = ((m + tm - 1) // tm) * tm          # ragged M -> zero pad
        s_parts.append(jnp.pad(s_cm, ((0, s_ch_pad - s_ch), (0, m_pad - m))))
        t_parts.append(jnp.pad(t_cm, ((0, t_ch_pad - t_ch), (0, m_pad - m))))
        n_blk = m_pad // tm
        blocks += [(l, off + j) for j in range(n_blk)]
        off += n_blk

    # Pad the tile list so it splits evenly across the core-parallel axis
    # (dummy tiles point at all-zero columns -> contribute 0).
    if len(blocks) % NUM_CORE_SPLITS:
        extra = NUM_CORE_SPLITS - len(blocks) % NUM_CORE_SPLITS
        s_parts.append(jnp.zeros((s_ch_pad, extra * tm), feature_dtype))
        t_parts.append(jnp.zeros((t_ch_pad, extra * tm), feature_dtype))
        blocks += [(0, off + j) for j in range(extra)]

    s_all = jnp.concatenate(s_parts, axis=1)       # (s_ch_pad, M_total)
    t_all = jnp.concatenate(t_parts, axis=1)       # (t_ch_pad, M_total)
    w_all = jnp.stack([
        jnp.pad(w, ((0, t_ch_pad - w.shape[0]), (0, s_ch_pad - w.shape[1])))
        for w in ws]).astype(feature_dtype)        # (L, t_ch_pad, s_ch_pad)

    n_half = len(blocks) // NUM_CORE_SPLITS
    blk = np.asarray(blocks, dtype=np.int32).reshape(NUM_CORE_SPLITS, n_half, 2)
    tile_layer = jnp.asarray(blk[..., 0])          # (2, n_half) int32
    tile_mblk = jnp.asarray(blk[..., 1])           # (2, n_half) int32

    out = pl.pallas_call(
        _fused_transform_mse_kernel,
        out_shape=jax.ShapeDtypeStruct((NUM_CORE_SPLITS, 8, 128), jnp.float32),
        grid_spec=pltpu.PrefetchScalarGridSpec(
            num_scalar_prefetch=2,
            grid=(NUM_CORE_SPLITS, n_half),
            in_specs=[
                pl.BlockSpec((s_ch_pad, tm),
                             lambda c, i, tl, tb: (0, tb[c, i])),
                pl.BlockSpec((t_ch_pad, tm),
                             lambda c, i, tl, tb: (0, tb[c, i])),
                pl.BlockSpec((None, t_ch_pad, s_ch_pad),
                             lambda c, i, tl, tb: (tl[c, i], 0, 0)),
            ],
            out_specs=pl.BlockSpec((None, 8, 128),
                                   lambda c, i, tl, tb: (c, 0, 0)),
            scratch_shapes=[pltpu.VMEM((t_ch_pad, tm), jnp.float32)],
        ),
        compiler_params=pltpu.CompilerParams(
            dimension_semantics=("parallel", "arbitrary")),
    )(tile_layer, tile_mblk, s_all, t_all, w_all)

    # per-core partial losses live in element [:, 0, 0]
    return out[:, 0, 0].sum()


# ----------------------------------------------------------------------------
# Plain-JAX glue
# ----------------------------------------------------------------------------
def nchw_to_cm(x):
    """(N, C, H, W) -> (C, N*H*W): channels on sublanes, spatial on lanes."""
    n, c, h, w = x.shape
    return jnp.transpose(x, (1, 0, 2, 3)).reshape(c, n * h * w)


def conv1x1_nchw(x, w_oc):
    # x: (N, C, H, W), w_oc: (out_ch, in_ch)
    return jnp.einsum('oc,nchw->nohw', w_oc, x)


def avgpool2(x):
    n, c, h, w = x.shape
    return x.reshape(n, c, h // 2, 2, w // 2, 2).mean(axis=(3, 5))


class TinyCNN:
    """Stand-in for t_model / s_model (the distillator treats them as given)."""

    def __init__(self, key, in_ch, chs, num_classes=10):
        k1, k2, k3 = jax.random.split(key, 3)
        self.chs = list(chs)
        self.w1 = jax.random.normal(k1, (chs[0], in_ch), jnp.float32) * 0.1
        self.w2 = jax.random.normal(k2, (chs[1], chs[0]), jnp.float32) * 0.1
        self.wfc = jax.random.normal(k3, (chs[1], num_classes), jnp.float32) * 0.1

    def get_ch_num(self):
        return self.chs

    def extract_feature(self, x, PreAct=True):
        h1 = conv1x1_nchw(x, self.w1)          # pre-activation feature 0
        a1 = jax.nn.relu(h1)
        p1 = avgpool2(a1)
        h2 = conv1x1_nchw(p1, self.w2)         # pre-activation feature 1
        a2 = jax.nn.relu(h2)
        gap = a2.mean(axis=(2, 3))             # (N, chs[1])
        out = gap @ self.wfc                   # (N, num_classes)
        feats = [h1, h2] if PreAct else [a1, a2]
        return feats, out


class OverhaulDistillatorPallas:
    """JAX/Pallas port of OverhaulDistillator (pre_act=True, use_margin=False)."""

    def __init__(self, key, t_model, s_model, pre_act=True,
                 tm=512, feature_dtype=jnp.bfloat16):
        self.t_model = t_model
        self.s_model = s_model
        self.pre_act = pre_act
        self.tm = tm
        self.feature_dtype = feature_dtype
        t_chs = t_model.get_ch_num()
        s_chs = s_model.get_ch_num()
        self.transform_ws = []
        for t_ch, s_ch in zip(t_chs, s_chs):
            key, sub = jax.random.split(key)
            # nn.Conv2d(s_ch, t_ch, 1, bias=False) init: normal(0, sqrt(2/n)),
            # n = k*k*out_ch = t_ch.  Stored in PyTorch (out_ch, in_ch) layout.
            w_conv = jax.random.normal(sub, (t_ch, s_ch), jnp.float32) \
                * math.sqrt(2.0 / float(t_ch))
            self.transform_ws.append(w_conv)

    def __call__(self, x, feature_dtype=None):
        dtype = self.feature_dtype if feature_dtype is None else feature_dtype
        t_feats, _t_out = self.t_model.extract_feature(x, PreAct=self.pre_act)
        s_feats, s_out = self.s_model.extract_feature(x, PreAct=self.pre_act)
        s_cm = [nchw_to_cm(f) for f in s_feats]
        t_cm = [nchw_to_cm(f) for f in t_feats]
        loss_distill = fused_transform_and_mse_loss(
            s_cm, t_cm, self.transform_ws, feature_dtype=dtype, tm=self.tm)
        return s_out, loss_distill

    # Pure-JAX reference for correctness checking (f32 throughout).
    def reference(self, x):
        t_feats, _ = self.t_model.extract_feature(x, PreAct=self.pre_act)
        s_feats, s_out = self.s_model.extract_feature(x, PreAct=self.pre_act)
        loss = jnp.float32(0.0)
        for i in range(len(t_feats)):
            s_cm = nchw_to_cm(s_feats[i])
            t_cm = nchw_to_cm(t_feats[i])
            s_t = self.transform_ws[i] @ s_cm
            loss = loss + jnp.sum((s_t - t_cm) ** 2)
        return s_out, loss


if __name__ == "__main__":
    key = jax.random.PRNGKey(0)
    kx, kt, ks, kd = jax.random.split(key, 4)

    # input x: NCHW, small shapes
    x = jax.random.normal(kx, (2, 3, 16, 16), jnp.float32)

    teacher = TinyCNN(kt, in_ch=3, chs=(32, 64), num_classes=10)
    student = TinyCNN(ks, in_ch=3, chs=(16, 32), num_classes=10)

    distillator = OverhaulDistillatorPallas(
        kd, teacher, student, pre_act=True, tm=512,
        feature_dtype=jnp.bfloat16)

    s_out_ref, loss_ref = distillator.reference(x)

    # default path: bf16 feature streaming, f32 accumulation
    s_out, loss_bf16 = distillator(x)
    s_out = jax.block_until_ready(s_out)
    loss_bf16 = jax.block_until_ready(loss_bf16)

    # full-precision path for a tight check
    _, loss_f32 = distillator(x, feature_dtype=jnp.float32)
    loss_f32 = jax.block_until_ready(loss_f32)

    assert s_out.shape == (2, 10)
    assert jnp.allclose(s_out, s_out_ref, rtol=1e-5, atol=1e-5)
    assert jnp.allclose(loss_f32, loss_ref, rtol=1e-4, atol=1e-2), \
        (loss_f32, loss_ref)
    assert jnp.allclose(loss_bf16, loss_ref, rtol=3e-2, atol=1e-1), \
        (loss_bf16, loss_ref)

    print("KERNEL_OK")
</pallas_src>

<mosaic_0001>
module attributes {stable_mosaic.version = 11 : i64} {
  func.func @_fused_transform_mse_kernel(%arg0: i32, %arg1: i32, %arg2: memref<2x1xi32, #tpu.memory_space<smem>>, %arg3: memref<2x1xi32, #tpu.memory_space<smem>>, %arg4: memref<32x512xbf16, #tpu.memory_space<vmem>>, %arg5: memref<64x512xbf16, #tpu.memory_space<vmem>>, %arg6: memref<1x64x32xbf16, #tpu.memory_space<vmem>>, %arg7: memref<1x8x128xf32, #tpu.memory_space<vmem>>, %arg8: memref<64x512xf32, #tpu.memory_space<vmem>>) attributes {dimension_semantics = [#tpu.dimension_semantics<parallel>, #tpu.dimension_semantics<arbitrary>], iteration_bounds = array<i64: 2, 1>, scalar_prefetch = 2 : i64, scratch_operands = 1 : i64, tpu.core_type = #tpu.core_type<tc>, window_params = [{transform_indices = @transform_0, window_bounds = array<i64: 32, 512>}, {transform_indices = @transform_1, window_bounds = array<i64: 64, 512>}, {transform_indices = @transform_2, window_bounds = array<i64: 1, 64, 32>}, {transform_indices = @transform_3, window_bounds = array<i64: 1, 8, 128>}]} {
    %c0_i32 = arith.constant 0 : i32
    %0 = arith.cmpi eq, %arg1, %c0_i32 : i32
    %1 = arith.extui %0 : i1 to i32
    %c0_i32_0 = arith.constant 0 : i32
    %2 = arith.cmpi ne, %1, %c0_i32_0 : i32
    scf.if %2 {
      %cst_13 = arith.constant 0.000000e+00 : f32
      %17 = vector.broadcast %cst_13 : f32 to vector<64x512xf32>
      %c0_14 = arith.constant 0 : index
      %c0_15 = arith.constant 0 : index
      %18 = vector.load %arg8[%c0_14, %c0_15] : memref<64x512xf32, #tpu.memory_space<vmem>>, vector<64x512xf32>
      tpu.vector_store %arg8[%c0_14, %c0_15], %17 {strides = array<i32>} : memref<64x512xf32, #tpu.memory_space<vmem>>, vector<64x512xf32>,
    } else {
    }
    %c0 = arith.constant 0 : index
    %c0_1 = arith.constant 0 : index
    %c0_2 = arith.constant 0 : index
    %3 = vector.load %arg6[%c0, %c0_1, %c0_2] : memref<1x64x32xbf16, #tpu.memory_space<vmem>>, vector<1x64x32xbf16>
    %4 = vector.shape_cast %3 : vector<1x64x32xbf16> to vector<64x32xbf16>
    %c0_3 = arith.constant 0 : index
    %c0_4 = arith.constant 0 : index
    %5 = vector.load %arg4[%c0_3, %c0_4] : memref<32x512xbf16, #tpu.memory_space<vmem>>, vector<32x512xbf16>
    %cst = arith.constant dense<0.000000e+00> : vector<64x512xf32>
    %6 = tpu.matmul %4, %5, %cst {dimension_numbers = #tpu.dot_dimension_numbers<[1], [0], [0], [1], [0, 0, 1, 1], [], []>} : vector<64x32xbf16>, vector<32x512xbf16>, vector<64x512xf32> -> vector<64x512xf32>
    %c0_5 = arith.constant 0 : index
    %c0_6 = arith.constant 0 : index
    %7 = vector.load %arg5[%c0_5, %c0_6] : memref<64x512xbf16, #tpu.memory_space<vmem>>, vector<64x512xbf16>
    %8 = arith.extf %7 : vector<64x512xbf16> to vector<64x512xf32>
    %9 = arith.subf %6, %8 : vector<64x512xf32>
    %c0_7 = arith.constant 0 : index
    %c0_8 = arith.constant 0 : index
    %10 = vector.load %arg8[%c0_7, %c0_8] : memref<64x512xf32, #tpu.memory_space<vmem>>, vector<64x512xf32>
    %11 = arith.mulf %9, %9 : vector<64x512xf32>
    %12 = arith.addf %10, %11 : vector<64x512xf32>
    %c0_9 = arith.constant 0 : index
    %c0_10 = arith.constant 0 : index
    %13 = vector.load %arg8[%c0_9, %c0_10] : memref<64x512xf32, #tpu.memory_space<vmem>>, vector<64x512xf32>
    tpu.vector_store %arg8[%c0_9, %c0_10], %12 {strides = array<i32>} : memref<64x512xf32, #tpu.memory_space<vmem>>, vector<64x512xf32>,
    %c0_i32_11 = arith.constant 0 : i32
    %14 = arith.cmpi eq, %arg1, %c0_i32_11 : i32
    %15 = arith.extui %14 : i1 to i32
    %c0_i32_12 = arith.constant 0 : i32
    %16 = arith.cmpi ne, %15, %c0_i32_12 : i32
    scf.if %16 {
      %cst_13 = arith.constant 0.000000e+00 : f32
      %17 = vector.broadcast %cst_13 : f32 to vector<8x128xf32>
      %c0_14 = arith.constant 0 : index
      %c0_15 = arith.constant 0 : index
      %18 = vector.load %arg8[%c0_14, %c0_15] : memref<64x512xf32, #tpu.memory_space<vmem>>, vector<64x512xf32>
      %19 = vector.shape_cast %18 : vector<64x512xf32> to vector<1x64x512xf32>
      %cst_16 = arith.constant dense<0.000000e+00> : vector<1xf32>
      %20 = vector.multi_reduction <add>, %19, %cst_16 [1, 2] : vector<1x64x512xf32> to vector<1xf32>
      %21 = vector.shape_cast %20 : vector<1xf32> to vector<1x1x1xf32>
      %22 = vector.extract %21[0, 0, 0] : f32 from vector<1x1x1xf32>
      %23 = vector.broadcast %22 : f32 to vector<8x128xf32>
      %24 = arith.addf %17, %23 : vector<8x128xf32>
      %c0_17 = arith.constant 0 : index
      %c0_18 = arith.constant 0 : index
      %c0_19 = arith.constant 0 : index
      %25 = vector.load %arg7[%c0_17, %c0_18, %c0_19] : memref<1x8x128xf32, #tpu.memory_space<vmem>>, vector<1x8x128xf32>
      %26 = vector.shape_cast %25 : vector<1x8x128xf32> to vector<8x128xf32>
      %27 = vector.shape_cast %24 : vector<8x128xf32> to vector<1x8x128xf32>
      tpu.vector_store %arg7[%c0_17, %c0_18, %c0_19], %27 {strides = array<i32>} : memref<1x8x128xf32, #tpu.memory_space<vmem>>, vector<1x8x128xf32>,
    } else {
    }
    return
  }
  func.func @transform_0(%arg0: i32, %arg1: i32, %arg2: memref<2x1xi32, #tpu.memory_space<smem>>, %arg3: memref<2x1xi32, #tpu.memory_space<smem>>) -> (i32, i32) {
    %0 = arith.index_cast %arg0 : i32 to index
    %1 = arith.index_cast %arg1 : i32 to index
    %2 = memref.load %arg3[%0, %1] : memref<2x1xi32, #tpu.memory_space<smem>>
    %c0_i32 = arith.constant 0 : i32
    %c0_i32_0 = arith.constant 0 : i32
    return %c0_i32, %2 : i32, i32
  }
  func.func @transform_1(%arg0: i32, %arg1: i32, %arg2: memref<2x1xi32, #tpu.memory_space<smem>>, %arg3: memref<2x1xi32, #tpu.memory_space<smem>>) -> (i32, i32) {
    %0 = arith.index_cast %arg0 : i32 to index
    %1 = arith.index_cast %arg1 : i32 to index
    %2 = memref.load %arg3[%0, %1] : memref<2x1xi32, #tpu.memory_space<smem>>
    %c0_i32 = arith.constant 0 : i32
    %c0_i32_0 = arith.constant 0 : i32
    return %c0_i32, %2 : i32, i32
  }
  func.func @transform_2(%arg0: i32, %arg1: i32, %arg2: memref<2x1xi32, #tpu.memory_space<smem>>, %arg3: memref<2x1xi32, #tpu.memory_space<smem>>) -> (i32, i32, i32) {
    %0 = arith.index_cast %arg0 : i32 to index
    %1 = arith.index_cast %arg1 : i32 to index
    %2 = memref.load %arg2[%0, %1] : memref<2x1xi32, #tpu.memory_space<smem>>
    %c0_i32 = arith.constant 0 : i32
    %c0_i32_0 = arith.constant 0 : i32
    %c0_i32_1 = arith.constant 0 : i32
    return %2, %c0_i32, %c0_i32_0 : i32, i32, i32
  }
  func.func @transform_3(%arg0: i32, %arg1: i32, %arg2: memref<2x1xi32, #tpu.memory_space<smem>>, %arg3: memref<2x1xi32, #tpu.memory_space<smem>>) -> (i32, i32, i32) {
    %c0_i32 = arith.constant 0 : i32
    %c0_i32_0 = arith.constant 0 : i32
    %c0_i32_1 = arith.constant 0 : i32
    return %arg0, %c0_i32, %c0_i32_0 : i32, i32, i32
  }
}

</mosaic_0001>

<bundles_post_ra>
// kernel: tpu_custom_call.1
= control target key start
LH: loop header
LB: loop body
LE: loop exit
PB: predicated region body
PF: predicated region fallthrough
CT: control target
= control target key end

     0   :  { %s1927_s0 = inlined_call_operand.vmem [shape: s32[2,1], index: 0, kind: input, shape index: {}]   ;;  %s1928_s2 = inlined_call_operand.hbm [shape: bf16[32,1024], index: 2, kind: input, shape index: {}]   ;;  %s1929_s3 = inlined_call_operand.hbm [shape: bf16[64,1024], index: 3, kind: input, shape index: {}]   ;;  %s1930_s4 = inlined_call_operand.vmem [shape: bf16[2,64,32], index: 4, kind: input, shape index: {}]   ;;  %s1931_s5 = inlined_call_operand.hbm [shape: f32[2,8,128], index: 5, kind: output, shape index: {}]   ;;  %s1932_s1 = inlined_call_operand.vmem [shape: s32[2,1], index: 1, kind: input, shape index: {}]  }
   0x1   :  { %1942 = sst [smem:[#allocation25_spill]] %s1928_s2  ;;  %s10_s20 = sshll.u32 %s1927_s0, 4  ;;  %s11_s20 = int_to_ptr.vmem [resolvable:$true] %s10_s20 }
   0x2   :  { %1943 = sst [smem:[#allocation26_spill]] %s1930_s4  ;;  %s14_s23 = sshll.u32 %s1932_s1, 4  ;;  %s15_s23 = int_to_ptr.vmem [resolvable:$true] %s14_s23 }
   0x3   :  { %1944 = sst [smem:[#allocation27_spill]] %s1931_s5  ;;  %s1279_s24 = scalar_lea.vmem %s11_s20, 32 }
   0x4   :  { %p1280_p0 = scmp.ne.s32.totalorder %s11_s20, %s1279_s24  ;;  %p1284_p1 = scmp.lt.s32.totalorder %s11_s20, %s11_s20 }
   0x5   :  { %p1285_p2 = scmp.lt.s32.totalorder %s1279_s24, %s1279_s24 }
   0x7   :  { %p1286_p3 = por %p1285_p2, %p1284_p1 }
   0x9   :  { %p1287_p4 = pnand %p1286_p3, %p1280_p0 }
   0xb   :  { %1290 = shalt.err (!%p1287_p4)  }
   0xc   :  { %s1501_s25 = smov [#allocation4]   ;;  %s1291_s26 = scalar_lea.vmem %s15_s23, 32 }
   0xd   :  { %13 = dma.vmem_to_smem %s11_s20, 32, %s1501_s25, [#allocation3] }
   0xe   :  { %p1292_p5 = scmp.ne.s32.totalorder %s15_s23, %s1291_s26  ;;  %p1296_p6 = scmp.lt.s32.totalorder %s15_s23, %s15_s23 }
   0xf   :  { %p1297_p7 = scmp.lt.s32.totalorder %s1291_s26, %s1291_s26 }
  0x11   :  { %p1298_p8 = por %p1297_p7, %p1296_p6 }
  0x13   :  { %p1299_p9 = pnand %p1298_p8, %p1292_p5 }
  0x15   :  { %1302 = shalt.err (!%p1299_p9)  }
  0x16   :  { %s1502_s0 = smov [#allocation5]  }
  0x17   :  { %17 = dma.vmem_to_smem %s15_s23, 32, %s1502_s0, [#allocation3] }
  0x18   :  { %1439 = dma.done.wait [#allocation3], 64 }
  0x19   :  { %1440 = vsyncadd [#allocation3], 4294967232 }
  0x1a   :  { %19 = sfence }
  0x1b   :  { %20 = vsyncpa [#allocation7], 0 }
  0x1c   :  { %22 = vsyncpa [#allocation7 + $0x1], 0 }
  0x1d   :  { %23 = vsyncpa [#allocation10], 0 }
  0x1e   :  { %25 = vsyncpa [#allocation10 + $0x1], 0 }
  0x1f   :  { %26 = vsyncpa [#allocation8], 0 }
  0x20   :  { %28 = vsyncpa [#allocation8 + $0x1], 0  ;;  %s1546_s1 = smov 0   ;;  %s1548_s27 = smov 0  }
  0x21   :  { %s1550_s28 = smov 0   ;;  %s1552_s29 = smov 0  }
  0x22   :  { %s1554_s30 = smov 0   ;;  %s1556_s6 = smov 0  }
  0x23   :  { %s1558_s7 = smov 0   ;;  %s1560_s8 = smov 0  }
  0x24   :  { %s1562_s9 = smov 0   ;;  %s1564_s10 = smov 0  }
  0x25   :  { %s1566_s11 = smov 0   ;;  %s1568_s12 = smov 0  }
  0x26 LB: > { %1945 = sst [smem:[#allocation20_spill]] %s1487_s9  ;;  %s1080_s13 = sadd.s32 4294967295, %s1499_s12   ;;  %s1499_s12 = sphi %s1568_s12, %s34_s12   ;;  %s1495_s11 = sphi %s1566_s11, %s1977_s11   ;;  %s1491_s10 = sphi %s1564_s10, %s1976_s10   ;;  %s1487_s9 = sphi %s1562_s9, %s1975_s9   ;;  %s1483_s8 = sphi %s1560_s8, %s1985_s8   ;;  %s1479_s7 = sphi %s1558_s7, %s1984_s7   ;;  %s1475_s6 = sphi %s1556_s6, %s1983_s6   ;;  %s1471_s30 = sphi %s1554_s30, %s1982_s30   ;;  %s1467_s29 = sphi %s1552_s29, %s1981_s29   ;;  %s1463_s28 = sphi %s1550_s28, %s1980_s28   ;;  %s1459_s27 = sphi %s1548_s27, %s1979_s27   ;;  %s1455_s1 = sphi %s1546_s1, %s1978_s1  }
  0x27   : > { %1946 = sst [smem:[#allocation21_spill]] %s1495_s11  ;;  %s1081_s14 = sadd.s32 4294967294, %s1499_s12  }
  0x28   : > { %s46_s15 = sadd.s32 1, %s1495_s11  ;;  %s1608_s16 = sshll.u32 %s1495_s11, 7 }
  0x29   : > { %p48_p10 = scmp.ge.s32.totalorder %s46_s15, 2  ;;  %s57_s17 = sld [smem:[#allocation5 + %s1608_s16]] }
  0x2a   : > { %s69_s18 = sadd.s32 1, %s1487_s9  ;;  %p76_p11 = scmp.ne.s32.totalorder %s1487_s9, %s1483_s8 }
  0x2b   : > { %s1987_s15 = smov (%p48_p10, %s46_s15), 0  ;;  %p1938_p12 = scmp.eq.s32.totalorder %s1499_s12, 0 }
  0x2c   : > { %1947 = sst [smem:[#allocation22_spill]] %s1987_s15  ;;  %p82_p13 = scmp.ne.s32.totalorder %s1483_s8, %s1479_s7 }
  0x2d   : > { %s1083_s19 = sshll.u32 %s1987_s15, 7  ;;  %p1619_p0 = scmp.eq.s32.totalorder %s1080_s13, 0 }
  0x2e   : > { %s65_s21 = sld [smem:[#allocation5 + %s1083_s19]]  ;;  %p1625_p1 = por %p1938_p12, %p76_p11 }
  0x2f   : > { %p1631_p2 = por %p1619_p0, %p82_p13  ;;  %s1636_s24 = sld [smem:[#allocation5 + %s1608_s16]] }
  0x30   : > { %s1638_s25 = sld [smem:[#allocation5 + %s1083_s19]]  ;;  %s176_s26 = ssub.s32 %s1495_s11, %s1987_s15 }
  0x31   : > { %s1950_s23 = scalar_select %p1631_p2, 1, 0 }
  0x32   : > { %p177_p3 = scmp.eq.s32.totalorder %s176_s26, 0  ;;  %s179_s0 = sadd.s32 1, %s1463_s28 }
  0x33   : > { %p189_p4 = scmp.ne.s32.totalorder %s1463_s28, %s1459_s27  ;;  %p190_p5 = scmp.eq.s32.totalorder %s1080_s13, 1 }
  0x34   : > { %s1646_s7 = scalar_select %p177_p3, %s1463_s28, %s179_s0  }
  0x35   : > { %s66_s5 = ssub.s32 %s57_s17, %s65_s21  ;;  %p1648_p6 = por %p190_p5, %p189_p4 }
  0x36   : > { %1951 = sst [smem:[#allocation23_spill]] %s1646_s7  ;;  %p67_p7 = scmp.eq.s32.totalorder %s66_s5, 0 }
  0x37   : > { %s1952_s4 = scalar_select %p1648_p6, 1, 0 }
  0x38   : > { %p195_p8 = scmp.ne.s32.totalorder %s1459_s27, %s1455_s1  ;;  %p196_p9 = scmp.eq.s32.totalorder %s1081_s14, 1 }
  0x39   : > { %s1656_s19 = scalar_select %p67_p7, %s1487_s9, %s69_s18  }
  0x3a   : > { %p1658_p11 = por %p196_p9, %p195_p8  ;;  %p1937_p13 = scmp.lt.s32.totalorder %s1499_s12, 2 }
  0x3b   : > { %1953 = sst [smem:[#allocation24_spill]] %s1656_s19  ;;  %s216_s13 = sand.u32 1, %s1487_s9  }
  0x3c   : > { %s1954_s26 = scalar_select %p1658_p11, 1, 0 }
  0x3d   : > { %s1090_s17 = sshll.u32 %s216_s13, 6  ;;  %p1668_p3 = pnand %p1937_p13, %p1625_p1 }
  0x3e   : > { %s1134_s14 = scalar_select %p1625_p1, [#allocation5], [#allocation12] }
  0x3f   : > { %s1135_s18 = scalar_select %p1625_p1, %s1608_s16, 0 }
  0x40   : > { %s1989_s14 = smov (!%p1937_p13, %s1134_s14), [#allocation14]  ;;  %s220_s21 = scalar_lea.vmem [#allocation6], %s1090_s17 }
  0x41   : > { %s1991_s18 = smov (!%p1937_p13, %s1135_s18), 0  ;;  %s235_s0 = sshll.u32 %s220_s21, 4  ;;  %s1681_s0 = int_to_ptr.vmem [resolvable:$true] %s235_s0 }
  0x42   : > { %s228_s15 = sld [smem:[%s1989_s14 + %s1991_s18]]  ;;  %p1098_p4 = scmp.ge.s32.totalorder %s1499_s12, 1 }
  0x43   : > { %p296_p5 = scmp.lt.s32.totalorder %s1499_s12, 3  ;;  %s1957_s2 = sld [smem:[#allocation25_spill]] }
  0x44   : > { %s108_s17 = ssub.s32 %s1636_s24, %s1638_s25  ;;  %s1696_s14 = scalar_lea.sflag [#allocation7], %s216_s13 }
  0x45   : > { %p1685_p7 = pnand %p1098_p4, %p296_p5  ;;  %p1305_p8 = pneg %p1668_p3 }
  0x47   : > { %s1956_s11 = scalar_select %p1685_p7, 1, 0 }
  0x48   : > { %s1129_s19 = sshll.u32 %s228_s15, 8 }
  0x49   : > { %s1692_s7 = scalar_lea.hbm %s1957_s2, %s1129_s19  ;;  %s1308_s9 = scalar_lea.hbm %s1957_s2, 2048 }
  0x4a   : > { %s1303_s18 = scalar_lea.hbm %s1692_s7, 1024  ;;  %p1309_p5 = scmp.lt.u32.totalorder %s1692_s7, %s1957_s2 }
  0x4b   : > { %p1304_p1 = scmp.ne.s32.totalorder %s1692_s7, %s1303_s18  ;;  %p1310_p10 = scmp.lt.u32.totalorder %s1308_s9, %s1303_s18 }
  0x4c   : > { %p1312_p12 = scmp.lt.u32.totalorder %s1303_s18, %s1692_s7 }
  0x4d   : > { %p1306_p9 = pnand %p1305_p8, %p1304_p1  ;;  %p1311_p13 = por %p1310_p10, %p1309_p5 }
  0x4f   : > { %p1307_p4 = pneg %p1306_p9  ;;  %p1313_p11 = por %p1312_p12, %p1311_p13 }
  0x51   : > { %p1314_p6 = pnand %p1313_p11, %p1307_p4 }
  0x53   : > { %1317 = shalt.err (!%p1314_p6)
}
  0x54   : > { %s1318_s13 = scalar_lea.vmem %s1681_s0, 1024  ;;  %s1503_s15 = smov [#allocation6]  }
  0x55   : > { %p1319_p1 = scmp.ne.s32.totalorder %s1681_s0, %s1318_s13  ;;  %s1323_s21 = sshll.u32 %s1503_s15, 4  ;;  %s1324_s21 = int_to_ptr.vmem [resolvable:$false] %s1323_s21 }
  0x56   : > { %s1325_s19 = scalar_lea.vmem %s1324_s21, 2048  ;;  %p1326_p7 = scmp.lt.s32.totalorder %s1681_s0, %s1324_s21 }
  0x57   : > { %p1321_p9 = pnand %p1319_p1, %p1305_p8  ;;  %p1327_p10 = scmp.lt.s32.totalorder %s1325_s19, %s1318_s13 }
  0x59   : > { %p1322_p2 = pneg %p1321_p9  ;;  %p1328_p5 = por %p1327_p10, %p1326_p7 }
  0x5b   : > { %p1329_p12 = pnand %p1328_p5, %p1322_p2 }
  0x5d   : > { %1332 = shalt.err (!%p1329_p12)
}
  0x5e   : > { %s1941_s18 = smov 512   ;;  %s1505_s9 = smov 256  }
  0x5f   : > { %s1506_s22 = smov 16   ;;  %p109_p2 = scmp.eq.s32.totalorder %s108_s17, 0 }
  0x60   : > { %1149 = dma.hbm_to_vmem [thread:$0]  (!%p1668_p3), %s1692_s7, 1024, %s1681_s0, %s1696_s14, %s1941_s18, %s1505_s9, %s1506_s22  }
  0x61   : > { %s111_s13 = sadd.s32 1, %s1475_s6  ;;  %p118_p6 = scmp.ne.s32.totalorder %s1475_s6, %s1471_s30 }
  0x62   : > { %p124_p11 = scmp.ne.s32.totalorder %s1471_s30, %s1467_s29  ;;  %p1958_p13 = scmp.eq.s32.totalorder %s1499_s12, 0 }
  0x63   : > { %s1736_s15 = scalar_select %p109_p2, %s1475_s6, %s111_s13  }
  0x64   : > { %p120_p7 = por %p118_p6, %p1958_p13  ;;  %p1742_p8 = por %p124_p11, %p1619_p0 }
  0x65   : > { %s245_s19 = sand.u32 1, %s1475_s6   ;;  %p1960_p4 = scmp.lt.s32.totalorder %s1499_s12, 2 }
  0x66   : > { %s1094_s5 = sshll.u32 %s245_s19, 7  ;;  %s1993_s16 = smov (!%p120_p7, %s1608_s16), 0 }
  0x67   : > { %p1749_p1 = pnand %p1960_p4, %p120_p7  ;;  %p1962_p3 = pmov %p1960_p4 }
  0x68   : > { %s1137_s24 = scalar_select %p120_p7, [#allocation5], [#allocation13] }
  0x69   : > { %p1963_p9 = pmov %p1962_p3  ;;  %s249_s20 = scalar_lea.vmem [#allocation9], %s1094_s5 }
  0x6a   : > { %s1995_s24 = smov (!%p1962_p3, %s1137_s24), [#allocation15]  ;;  %s264_s25 = sshll.u32 %s249_s20, 4  ;;  %s1758_s25 = int_to_ptr.vmem [resolvable:$true] %s264_s25 }
  0x6b   : > { %s1997_s16 = smov (!%p1963_p9, %s1993_s16), 0  ;;  %s1765_s13 = scalar_lea.sflag [#allocation10], %s245_s19 }
  0x6c   : > { %s257_s29 = sld [smem:[%s1995_s24 + %s1997_s16]]  ;;  %p1335_p10 = pneg %p1749_p1 }
  0x6d   : > { %s1338_s24 = scalar_lea.hbm %s1929_s3, 4096 }
  0x72   : > { %s1130_s7 = sshll.u32 %s257_s29, 8 }
  0x73   : > { %s1763_s14 = scalar_lea.hbm %s1929_s3, %s1130_s7 }
  0x74   : > { %s1333_s18 = scalar_lea.hbm %s1763_s14, 2048  ;;  %p1339_p2 = scmp.lt.u32.totalorder %s1763_s14, %s1929_s3 }
  0x75   : > { %p1334_p0 = scmp.ne.s32.totalorder %s1763_s14, %s1333_s18  ;;  %p1340_p6 = scmp.lt.u32.totalorder %s1338_s24, %s1333_s18 }
  0x76   : > { %p1342_p13 = scmp.lt.u32.totalorder %s1333_s18, %s1763_s14 }
  0x77   : > { %p1336_p5 = pnand %p1335_p10, %p1334_p0  ;;  %p1341_p11 = por %p1340_p6, %p1339_p2 }
  0x79   : > { %p1337_p12 = pneg %p1336_p5  ;;  %p1343_p7 = por %p1342_p13, %p1341_p11 }
  0x7b   : > { %p1344_p4 = pnand %p1343_p7, %p1337_p12 }
  0x7d   : > { %1347 = shalt.err (!%p1344_p4)
}
  0x7e   : > { %s1348_s19 = scalar_lea.vmem %s1758_s25, 2048  ;;  %s1507_s7 = smov [#allocation9]  }
  0x7f   : > { %p1349_p3 = scmp.ne.s32.totalorder %s1758_s25, %s1348_s19  ;;  %s1353_s0 = sshll.u32 %s1507_s7, 4  ;;  %s1354_s0 = int_to_ptr.vmem [resolvable:$false] %s1353_s0 }
  0x80   : > { %s1355_s17 = scalar_lea.vmem %s1354_s0, 4096  ;;  %p1356_p5 = scmp.lt.s32.totalorder %s1758_s25, %s1354_s0 }
  0x81   : > { %p1351_p9 = pnand %p1349_p3, %p1335_p10  ;;  %p1357_p2 = scmp.lt.s32.totalorder %s1355_s17, %s1348_s19 }
  0x83   : > { %p1352_p0 = pneg %p1351_p9  ;;  %p1358_p6 = por %p1357_p2, %p1356_p5 }
  0x85   : > { %p1359_p11 = pnand %p1358_p6, %p1352_p0 }
  0x87   : > { %1362 = shalt.err (!%p1359_p11)
}
  0x88   : > { %s1964_s18 = smov 512   ;;  %p1965_p10 = scmp.ne.s32.totalorder %s1956_s11, 0 }
  0x89   : > { %1154 = dma.hbm_to_vmem [thread:$0]  (!%p1749_p1), %s1763_s14, 2048, %s1758_s25, %s1765_s13, %s1964_s18, %s1505_s9, %s1506_s22  }
  0x8a   : > { %300 = sbr.rel (%p1965_p10) target bundleno = 661 (0x295), region = 32  ;;  %s302_s16 = sand.u32 (!%p1965_p10), 1, %s1483_s8  }
  0x8b   : > { %s1099_s5 = sshll.u32 (!%p1965_p10), %s302_s16, 6  ;;  %s303_s24 = scalar_lea.sflag (!%p1965_p10), [#allocation7], %s302_s16 }
  0x8c   : > { %s306_s29 = scalar_lea.vmem (!%p1965_p10), [#allocation6], %s1099_s5  ;;  %p1966_p12 = scmp.ne.s32.totalorder (!%p1965_p10), %s1950_s23, 0 }
  0x91   : > { %1442 = dma.done.wait (%p1966_p12), %s303_s24, 1024  }
  0x92   : > { %1444 = vsyncadd (%p1966_p12), %s303_s24, 4294966272  ;;  %s311_s2 = sand.u32 1, %s1471_s30  }
  0x93   : > { %s1100_s20 = sshll.u32 %s311_s2, 7  ;;  %s312_s19 = scalar_lea.sflag [#allocation10], %s311_s2 }
  0x94   : > { %s1804_s9 = scalar_lea.vmem [#allocation9], %s1100_s20 }
  0x95   : > { %1446 = dma.done.wait (%p1742_p8), %s312_s19, 2048  }
  0x96   : > { %1448 = vsyncadd (%p1742_p8), %s312_s19, 4294965248  ;;  %s1102_s11 = sshll.u32 %s1491_s10, 7  ;;  %v1508_v0 = vmov 0   ;;  %v1263_v1 = vld [vmem:[%s306_s29 + $0x4] ss:$16 sps:$4 sm:$0xff]   ;;  %s1967_s14 = sld [smem:[#allocation26_spill]] }
  0x97   : > { %553 = vmatprep.mubr.bf16.mxu0 %v1508_v0  ;;  %626 = vmatprep.mubr.bf16.mxu1 %v1508_v0  ;;  %s381_s23 = sld [smem:[#allocation4 + %s1102_s11]]  ;;  %v1265_v2 = vld [vmem:[%s306_s29 + $0xc] ss:$16 sps:$4 sm:$0xff]   ;;  %v1267_v3 = vld [vmem:[%s306_s29] ss:$16 sps:$4 sm:$0xff]   ;;  %vm508_vm0 = vcmask 261120  }
  0x98   : > { %521 = vmatprep.subr.bf16.mxu0 %v1263_v1  ;;  %v1268_v4 = vld [vmem:[%s306_s29 + $0x8] ss:$16 sps:$4 sm:$0xff]   ;;  %594 = vmatprep.subr.bf16.mxu1 %v1265_v2  ;;  %v1269_v5 = vld [vmem:[%s306_s29 + $0x24] ss:$16 sps:$4 sm:$0xff]   ;;  %v1271_v6 = vld [vmem:[%s306_s29 + $0x2c] ss:$16 sps:$4 sm:$0xff]  }
  0x99   : > { %522 = vmatpush1.bf16.msra.mxu0 %v1267_v3  ;;  %595 = vmatpush1.bf16.msra.mxu1 %v1268_v4  ;;  %v1273_v7 = vld [vmem:[%s306_s29 + $0x20] ss:$16 sps:$4 sm:$0xff]   ;;  %v1274_v8 = vld [vmem:[%s306_s29 + $0x28] ss:$16 sps:$4 sm:$0xff]   ;;  %s353_s7 = sand.u32 1, %s1459_s27   ;;  %s1968_s29 = sld [smem:[#allocation27_spill]] }
  0x9a   : > { %523 = vmatprep.subr.bf16.mxu0 %v1269_v5  ;;  %596 = vmatprep.subr.bf16.mxu1 %v1271_v6  ;;  %v667_v13 = vld [vmem:[%s1804_s9] sm:$0xff]  ;;  %v668_v14 = vld [vmem:[%s1804_s9 + $0x8] sm:$0xff]  ;;  %v669_v18 = vld [vmem:[%s1804_s9 + $0x10] sm:$0xff]  ;;  %s1101_s0 = sshll.u32 %s353_s7, 3  ;;  %s954_s19 = scalar_lea.sflag [#allocation8], %s353_s7 }
  0x9b   : > { %v683_v15 = vunpack.c.l.bf16 %v667_v13  ;;  %v685_v16 = vunpack.c.l.bf16 %v668_v14  ;;  %v684_v17 = vunpack.c.h.bf16 %v667_v13  ;;  %v686_v21 = vunpack.c.h.bf16 %v668_v14  ;;  %v670_v31 = vld [vmem:[%s1804_s9 + $0x18] sm:$0xff]  ;;  %v671_v38 = vld [vmem:[%s1804_s9 + $0x20] sm:$0xff]  ;;  %v672_v50 = vld [vmem:[%s1804_s9 + $0x28] sm:$0xff]  ;;  %s355_s17 = scalar_lea.vmem [#allocation11], %s1101_s0  ;;  %p1970_p13 = scmp.ne.s32.totalorder %s1952_s4, 0 }
  0x9c   : > { %v687_v28 = vunpack.c.l.bf16 %v669_v18  ;;  %v688_v37 = vunpack.c.h.bf16 %v669_v18  ;;  %v689_v41 = vunpack.c.l.bf16 %v670_v31  ;;  %v690_v42 = vunpack.c.h.bf16 %v670_v31  ;;  %v673_v4 = vld [vmem:[%s1804_s9 + $0x30] sm:$0xff]  ;;  %s967_s18 = sshll.u32 %s355_s17, 4  ;;  %s1856_s18 = int_to_ptr.vmem [resolvable:$true] %s967_s18 }
  0x9d   : > { %p382_p1 = scmp.lt.s32.totalorder %s381_s23, 1  ;;  %524 = vmatpush1.bf16.msra.mxu0 %v1273_v7  ;;  %597 = vmatpush1.bf16.msra.mxu1 %v1274_v8  ;;  %v691_v47 = vunpack.c.l.bf16 %v671_v38  ;;  %v692_v58 = vunpack.c.h.bf16 %v671_v38  ;;  %v694_v5 = vunpack.c.h.bf16 %v672_v50  ;;  %v696_v18 = vunpack.c.h.bf16 %v673_v4 }
  0x9f   : > { %s1999_s23 = smov (!%p382_p1, %s381_s23), 1  ;;  %s1969_s2 = smov %s1968_s29 }
  0xa0   : > { %s1131_s22 = sshll.u32 %s1999_s23, 5  ;;  %s1863_s20 = scalar_lea.hbm %s1968_s29, %s1102_s11 }
  0xa1   : > { %s386_s13 = scalar_lea.vmem %s1967_s14, %s1131_s22  ;;  %s1509_s23 = smov [#allocation11]  }
  0xa2   : > { %v1275_v9 = vld [vmem:[%s386_s13] sm:$0xff]   ;;  %v1276_v10 = vld [vmem:[%s386_s13 + $0x8] sm:$0xff]   ;;  %v1277_v11 = vld [vmem:[%s386_s13 + $0x10] sm:$0xff]   ;;  %s1367_s22 = sshll.u32 %s1509_s23, 4  ;;  %s1368_s22 = int_to_ptr.vmem [resolvable:$false] %s1367_s22 }
  0xa3   : > { %1117 = vmatmul.mubr.msk.bf16.vlgmr.msra.gmra.mrb[0].mxu0 %vm508_vm0, %v1275_v9  ;;  %1121 = vmatmul.mubr.msk.bf16.vlgmr.msra.gmra.mrb[0].mxu1 %vm508_vm0, %v1275_v9  ;;  %v1278_v12 = vld [vmem:[%s386_s13 + $0x18] sm:$0xff]   ;;  %s1369_s21 = scalar_lea.vmem %s1368_s22, 256  ;;  %p1370_p3 = scmp.lt.s32.totalorder %s1856_s18, %s1368_s22 }
  0xa4   : > { %563 = vmatprep.mubr.bf16.mxu0 %v1508_v0  ;;  %636 = vmatprep.mubr.bf16.mxu1 %v1508_v0 }
  0xab   : > { %1118 = vmatmul.mubr.msk.bf16.gmra.mrb[4].mxu0 %vm508_vm0, %v1276_v10  ;;  %1122 = vmatmul.mubr.msk.bf16.gmra.mrb[4].mxu1 %vm508_vm0, %v1276_v10 }
  0xac   : > { %573 = vmatprep.mubr.bf16.mxu0 %v1508_v0  ;;  %646 = vmatprep.mubr.bf16.mxu1 %v1508_v0 }
  0xb3   : > { %1119 = vmatmul.mubr.msk.bf16.gmra.mrb[8].mxu0 %vm508_vm0, %v1277_v11  ;;  %1123 = vmatmul.mubr.msk.bf16.gmra.mrb[8].mxu1 %vm508_vm0, %v1277_v11 }
  0xb4   : > { %583 = vmatprep.mubr.bf16.mxu0 %v1508_v0  ;;  %656 = vmatprep.mubr.bf16.mxu1 %v1508_v0  ;;  %v693_v0 = vunpack.c.l.bf16 %v672_v50 }
  0xbb   : > { %1120 = vmatmul.mubr.msk.bf16.gmra.mrb[12].mxu0 %vm508_vm0, %v1278_v12  ;;  %1124 = vmatmul.mubr.msk.bf16.gmra.mrb[12].mxu1 %vm508_vm0, %v1278_v12 }
 0x176   : > { %v555_v19 = vpop.f32.mrb[0].mxu0  ;;  %v628_v20 = vpop.f32.mrb[0].mxu1 }
 0x177   : > { %v715_v22 = vsub.f32 %v555_v19, %v683_v15  ;;  %v717_v23 = vsub.f32 %v628_v20, %v685_v16  ;;  %v557_v24 = vpop.f32.mrb[1].mxu0  ;;  %v630_v25 = vpop.f32.mrb[1].mxu1  ;;  %v695_v15 = vunpack.c.l.bf16 %v673_v4  ;;  %v674_v19 = vld [vmem:[%s1804_s9 + $0x38] sm:$0xff] }
 0x178   : > { %v716_v26 = vsub.f32 %v557_v24, %v684_v17  ;;  %v559_v27 = vpop.f32.mrb[2].mxu0  ;;  %v632_v29 = vpop.f32.mrb[2].mxu1  ;;  %v718_v36 = vsub.f32 %v630_v25, %v686_v21 }
 0x179   : > { %v779_v30 = vmul.f32 %v715_v22, %v715_v22  ;;  %v561_v32 = vpop.f32.mrb[3].mxu0  ;;  %v634_v33 = vpop.f32.mrb[3].mxu1  ;;  %v781_v34 = vmul.f32 %v717_v23, %v717_v23  ;;  %v719_v40 = vsub.f32 %v559_v27, %v687_v28  ;;  %v721_v54 = vsub.f32 %v632_v29, %v689_v41 }
 0x17a   : > { %v780_v35 = vmul.f32 %v716_v26, %v716_v26  ;;  %v782_v43 = vmul.f32 %v718_v36, %v718_v36  ;;  %v720_v45 = vsub.f32 %v561_v32, %v688_v37  ;;  %v722_v57 = vsub.f32 %v634_v33, %v690_v42  ;;  %v675_v26 = vld [vmem:[%s1804_s9 + $0x40] sm:$0xff]  ;;  %v676_v37 = vld [vmem:[%s1804_s9 + $0x48] sm:$0xff] }
 0x17b   : > { %v783_v53 = vmul.f32 %v719_v40, %v719_v40  ;;  %v785_v1 = vmul.f32 %v721_v54, %v721_v54  ;;  %v697_v29 = vunpack.c.l.bf16 %v674_v19 }
 0x17c   : > { %v910_v39 = vadd.f32 %v780_v35, %v779_v30  ;;  %v784_v62 = vmul.f32 %v720_v45, %v720_v45  ;;  %v786_v3 = vmul.f32 %v722_v57, %v722_v57  ;;  %v698_v30 = vunpack.c.h.bf16 %v674_v19  ;;  %v677_v57 = vld [vmem:[%s1804_s9 + $0x50] sm:$0xff] }
 0x17e   : > { %v911_v44 = vadd.f32 %v910_v39, %v781_v34  ;;  %v565_v46 = vpop.f32.mrb[4].mxu0  ;;  %v638_v48 = vpop.f32.mrb[4].mxu1  ;;  %v699_v34 = vunpack.c.l.bf16 %v675_v26 }
 0x17f   : > { %v567_v49 = vpop.f32.mrb[5].mxu0  ;;  %v640_v51 = vpop.f32.mrb[5].mxu1  ;;  %v723_v63 = vsub.f32 %v565_v46, %v691_v47  ;;  %v725_v9 = vsub.f32 %v638_v48, %v693_v0  ;;  %v700_v46 = vunpack.c.h.bf16 %v675_v26  ;;  %v704_v0 = vunpack.c.h.bf16 %v677_v57 }
 0x180   : > { %v912_v52 = vadd.f32 %v911_v44, %v782_v43  ;;  %v569_v55 = vpop.f32.mrb[6].mxu0  ;;  %v642_v56 = vpop.f32.mrb[6].mxu1  ;;  %v724_v8 = vsub.f32 %v567_v49, %v692_v58  ;;  %v726_v25 = vsub.f32 %v640_v51, %v694_v5 }
 0x181   : > { %v571_v59 = vpop.f32.mrb[7].mxu0  ;;  %v644_v60 = vpop.f32.mrb[7].mxu1  ;;  %v787_v7 = vmul.f32 %v723_v63, %v723_v63  ;;  %v789_v24 = vmul.f32 %v725_v9, %v725_v9  ;;  %v727_v28 = vsub.f32 %v569_v55, %v695_v15  ;;  %v729_v42 = vsub.f32 %v642_v56, %v697_v29 }
 0x182   : > { %v913_v61 = vadd.f32 %v912_v52, %v783_v53  ;;  %v788_v23 = vmul.f32 %v724_v8, %v724_v8  ;;  %v728_v31 = vsub.f32 %v571_v59, %v696_v18  ;;  %v790_v33 = vmul.f32 %v726_v25, %v726_v25 }
 0x183   : > { %v791_v40 = vmul.f32 %v727_v28, %v727_v28  ;;  %v730_v45 = vsub.f32 %v644_v60, %v698_v30  ;;  %v701_v52 = vunpack.c.l.bf16 %v676_v37  ;;  %v793_v53 = vmul.f32 %v729_v42, %v729_v42 }
 0x184   : > { %v914_v2 = vadd.f32 %v913_v61, %v784_v62  ;;  %v792_v49 = vmul.f32 %v728_v31, %v728_v31  ;;  %v702_v56 = vunpack.c.h.bf16 %v676_v37  ;;  %v703_v63 = vunpack.c.l.bf16 %v677_v57 }
 0x185   : > { %v794_v55 = vmul.f32 %v730_v45, %v730_v45 }
 0x186   : > { %v915_v6 = vadd.f32 %v914_v2, %v785_v1  ;;  %v575_v10 = vpop.f32.mrb[8].mxu0  ;;  %v648_v11 = vpop.f32.mrb[8].mxu1  ;;  %v678_v1 = vld [vmem:[%s1804_s9 + $0x58] sm:$0xff] }
 0x187   : > { %v577_v12 = vpop.f32.mrb[9].mxu0  ;;  %v650_v13 = vpop.f32.mrb[9].mxu1  ;;  %v731_v51 = vsub.f32 %v575_v10, %v699_v34  ;;  %v733_v62 = vsub.f32 %v648_v11, %v701_v52  ;;  %v705_v9 = vunpack.c.l.bf16 %v678_v1  ;;  %v706_v10 = vunpack.c.h.bf16 %v678_v1  ;;  %v680_v11 = vld [vmem:[%s1804_s9 + $0x68] sm:$0xff] }
 0x188   : > { %v916_v14 = vadd.f32 %v915_v6, %v786_v3  ;;  %v579_v16 = vpop.f32.mrb[10].mxu0  ;;  %v1831_v17 = vpop.f32.mrb[10].mxu1  ;;  %v732_v61 = vsub.f32 %v577_v12, %v700_v46  ;;  %v734_v5 = vsub.f32 %v650_v13, %v702_v56  ;;  %v679_v6 = vld [vmem:[%s1804_s9 + $0x60] sm:$0xff]  ;;  %v709_v28 = vunpack.c.l.bf16 %v680_v11 }
 0x189   : > { %v581_v20 = vpop.f32.mrb[11].mxu0  ;;  %v654_v21 = vpop.f32.mrb[11].mxu1  ;;  %v795_v59 = vmul.f32 %v731_v51, %v731_v51  ;;  %v797_v4 = vmul.f32 %v733_v62, %v733_v62  ;;  %v735_v8 = vsub.f32 %v579_v16, %v703_v63  ;;  %v707_v12 = vunpack.c.l.bf16 %v679_v6 }
 0x18a   : > { %v917_v22 = vadd.f32 %v916_v14, %v787_v7  ;;  %v796_v3 = vmul.f32 %v732_v61, %v732_v61  ;;  %v736_v14 = vsub.f32 %v581_v20, %v704_v0  ;;  %v798_v18 = vmul.f32 %v734_v5, %v734_v5  ;;  %v681_v20 = vld [vmem:[%s1804_s9 + $0x70] sm:$0xff] }
 0x18b   : > { %v799_v19 = vmul.f32 %v735_v8, %v735_v8  ;;  %v708_v25 = vunpack.c.h.bf16 %v679_v6  ;;  %v710_v31 = vunpack.c.h.bf16 %v680_v11  ;;  %v712_v42 = vunpack.c.h.bf16 %v681_v20 }
 0x18c   : > { %v918_v27 = vadd.f32 %v917_v22, %v788_v23  ;;  %v737_v23 = vsub.f32 %v1831_v17, %v705_v9  ;;  %v800_v26 = vmul.f32 %v736_v14, %v736_v14  ;;  %v682_v17 = vld [vmem:[%s1804_s9 + $0x78] sm:$0xff]  ;;  %s1363_s9 = scalar_lea.vmem %s1856_s18, 128 }
 0x18d   : > { %v713_v51 = vunpack.c.l.bf16 %v682_v17  ;;  %p1364_p8 = scmp.ne.s32.totalorder %s1856_s18, %s1363_s9  ;;  %p1371_p9 = scmp.lt.s32.totalorder %s1369_s21, %s1363_s9 }
 0x18e   : > { %v919_v32 = vadd.f32 %v918_v27, %v789_v24  ;;  %v585_v35 = vpop.f32.mrb[12].mxu0  ;;  %v658_v36 = vpop.f32.mrb[12].mxu1  ;;  %v738_v24 = vsub.f32 %v654_v21, %v706_v10  ;;  %v801_v16 = vmul.f32 %v737_v23, %v737_v23 }
 0x18f   : > { %v587_v38 = vpop.f32.mrb[13].mxu0  ;;  %v1836_v39 = vpop.f32.mrb[13].mxu1  ;;  %v739_v27 = vsub.f32 %v585_v35, %v707_v12  ;;  %v741_v37 = vsub.f32 %v658_v36, %v709_v28  ;;  %p1365_p7 = pnand %p1364_p8, %p1970_p13  ;;  %p1372_p0 = por %p1371_p9, %p1370_p3 }
 0x190   : > { %v920_v41 = vadd.f32 %v919_v32, %v790_v33  ;;  %v1838_v43 = vpop.f32.mrb[14].mxu0  ;;  %v1840_v44 = vpop.f32.mrb[14].mxu1  ;;  %v802_v30 = vmul.f32 %v738_v24, %v738_v24  ;;  %v740_v34 = vsub.f32 %v587_v38, %v708_v25 }
 0x191   : > { %v591_v47 = vpop.f32.mrb[15].mxu0  ;;  %v1842_v48 = vpop.f32.mrb[15].mxu1  ;;  %v803_v33 = vmul.f32 %v739_v27, %v739_v27  ;;  %v805_v46 = vmul.f32 %v741_v37, %v741_v37  ;;  %v745_v36 = vsub.f32 %v1840_v44, %v713_v51  ;;  %p1366_p4 = pneg %p1365_p7 }
 0x192   : > { %v921_v50 = vadd.f32 %v920_v41, %v791_v40  ;;  %v711_v41 = vunpack.c.l.bf16 %v681_v20  ;;  %v804_v45 = vmul.f32 %v740_v34, %v740_v34  ;;  %v744_v52 = vsub.f32 %v591_v47, %v712_v42 }
 0x193   : > { %v809_v61 = vmul.f32 %v745_v36, %v745_v36  ;;  %p1373_p5 = pnand %p1372_p0, %p1366_p4 }
 0x194   : > { %v922_v54 = vadd.f32 %v921_v50, %v792_v49  ;;  %v742_v49 = vsub.f32 %v1836_v39, %v710_v31  ;;  %v743_v50 = vsub.f32 %v1838_v43, %v711_v41  ;;  %v808_v56 = vmul.f32 %v744_v52, %v744_v52 }
 0x196   : > { %v923_v58 = vadd.f32 %v922_v54, %v793_v53  ;;  %v806_v54 = vmul.f32 %v742_v49, %v742_v49  ;;  %v807_v57 = vmul.f32 %v743_v50, %v743_v50 }
 0x198   : > { %v924_v60 = vadd.f32 %v923_v58, %v794_v55  ;;  %v714_v55 = vunpack.c.h.bf16 %v682_v17 }
 0x19a   : > { %v925_v2 = vadd.f32 %v924_v60, %v795_v59  ;;  %v746_v59 = vsub.f32 %v1842_v48, %v714_v55 }
 0x19c   : > { %v926_v7 = vadd.f32 %v925_v2, %v796_v3  ;;  %v810_v39 = vmul.f32 %v746_v59, %v746_v59 }
 0x19e   : > { %v927_v15 = vadd.f32 %v926_v7, %v797_v4 }
 0x1a0   : > { %v928_v22 = vadd.f32 %v927_v15, %v798_v18 }
 0x1a2   : > { %v929_v13 = vadd.f32 %v928_v22, %v799_v19 }
 0x1a4   : > { %v930_v29 = vadd.f32 %v929_v13, %v800_v26 }
 0x1a6   : > { %v931_v32 = vadd.f32 %v930_v29, %v801_v16 }
 0x1a8   : > { %v932_v40 = vadd.f32 %v931_v32, %v802_v30 }
 0x1aa   : > { %v933_v21 = vadd.f32 %v932_v40, %v803_v33 }
 0x1ac   : > { %v934_v35 = vadd.f32 %v933_v21, %v804_v45 }
 0x1ae   : > { %v935_v53 = vadd.f32 %v934_v35, %v805_v46 }
 0x1b0   : > { %v936_v38 = vadd.f32 %v935_v53, %v806_v54 }
 0x1b2   : > { %v937_v58 = vadd.f32 %v936_v38, %v807_v57 }
 0x1b4   : > { %v938_v62 = vadd.f32 %v937_v58, %v808_v56 }
 0x1b6   : > { %v939_v60 = vadd.f32 %v938_v62, %v809_v61 }
 0x1b8   : > { %v940_v63 = vadd.f32 %v939_v60, %v810_v39 }
 0x1ba   : > { %941 = vadd.xlane.f32.xlu0 %v940_v63 }
 0x247   : > { %v942_v43 = vpop.xlane.xlu0 %941 }
 0x248   : > { %v943_v47 = vrot.slane %v942_v43, 4 }
 0x24a   : > { %v944_v0 = vadd.f32 %v943_v47, %v942_v43 }
 0x24c   : > { %v945_v1 = vrot.slane %v944_v0, 2 }
 0x24e   : > { %v946_v2 = vadd.f32 %v945_v1, %v944_v0 }
 0x250   : > { %v947_v3 = vrot.slane %v946_v2, 1 }
 0x252   : > { %v948_v44 = vadd.f32 %v947_v3, %v946_v2 }
 0x254   : > { %1132 = vpush %v948_v44 }
 0x285   : > { %s1133_s16 = spop %1132 }
 0x286   : > { %v950_v48 = vstv %s1133_s16 }
 0x287   : > { %952 = vst [vmem:[%s355_s17] sm:$0xff] %v950_v48 }
 0x288   : > { %1376 = shalt.err (!%p1373_p5)
}
 0x289   : > { %s1377_s10 = scalar_lea.hbm %s1863_s20, 128  ;;  %s1381_s14 = scalar_lea.hbm %s1969_s2, 256 }
 0x28a   : > { %p1378_p2 = scmp.ne.s32.totalorder %s1863_s20, %s1377_s10  ;;  %p1382_p10 = scmp.lt.u32.totalorder %s1863_s20, %s1969_s2 }
 0x28b   : > { %p1383_p12 = scmp.lt.u32.totalorder %s1381_s14, %s1377_s10  ;;  %p1385_p8 = scmp.lt.u32.totalorder %s1377_s10, %s1863_s20 }
 0x28c   : > { %p1379_p6 = pnand %p1378_p2, %p1970_p13 }
 0x28d   : > { %p1384_p1 = por %p1383_p12, %p1382_p10 }
 0x28e   : > { %p1380_p11 = pneg %p1379_p6 }
 0x28f   : > { %p1386_p7 = por %p1385_p8, %p1384_p1 }
 0x291   : > { %p1387_p4 = pnand %p1386_p7, %p1380_p11 }
 0x293   : > { %1390 = shalt.err (!%p1387_p4)
}
 0x294   : > { %1142 = dma.vmem_to_hbm [thread:$0]  (%p1970_p13), %s1856_s18, 128, %s1863_s20, %s954_s19  }
 0x295 PF: > { %s979_s0 = sand.u32 1, %s1455_s1   ;;  %p1971_p3 = scmp.ne.s32.totalorder %s1954_s26, 0 }
 0x296   : > { %p1972_p9 = scmp.ge.s32.totalorder %s1499_s12, 2  ;;  %s980_s17 = scalar_lea.sflag [#allocation8], %s979_s0 }
 0x298   : > { %p1156_p0 = pnand %p1972_p9, %p1971_p3 }
 0x29a   : > { %1450 = dma.done.wait (!%p1156_p0), %s980_s17, 128  }
 0x29b   : > { %1452 = vsyncadd (!%p1156_p0), %s980_s17, 4294967168  ;;  %s34_s12 = sadd.s32 1, %s1499_s12   ;;  %s1973_s4 = sld [smem:[#allocation23_spill]] }
 0x29c   : > { %p31_p5 = scmp.ge.s32.totalorder %s34_s12, 4   ;;  %s1974_s18 = sld [smem:[#allocation20_spill]] }
 0x29d   : > { %s1975_s9 = sld [smem:[#allocation24_spill]]  ;;  %s1976_s10 = sld [smem:[#allocation21_spill]] }
 0x29e   : > { %s1977_s11 = sld [smem:[#allocation22_spill]]  ;;  %s1978_s1 = smov %s1459_s27 }
 0x29f   : > { %s1979_s27 = smov %s1463_s28  ;;  %s1981_s29 = smov %s1471_s30 }
 0x2a0   : > { %s1982_s30 = smov %s1475_s6  ;;  %s1983_s6 = smov %s1736_s15 }
 0x2a1   : > { %s1980_s28 = smov %s1973_s4  ;;  %s1984_s7 = smov %s1483_s8 }
 0x2a2   : > { %s1985_s8 = smov %s1974_s18  ;;  %33 = sbr.rel (!%p31_p5) target bundleno = 38 (0x26), region = 101 }
 0x2a9   :  { %985 = vsyncpa [#allocation7], 1 }
 0x2aa   :  { %987 = vsyncpa [#allocation7 + $0x1], 1 }
 0x2ab   :  { %988 = vsyncpa [#allocation10], 1 }
 0x2ac   :  { %990 = vsyncpa [#allocation10 + $0x1], 1 }
 0x2ad   :  { %991 = vsyncpa [#allocation8], 1 }
 0x2ae   :  { %993 = vsyncpa [#allocation8 + $0x1], 1 }

</bundles_post_ra>
